<compile_context>
chip_gen: v7x
topology: tpu7x:2x2x1
jax: 0.10.0
libtpu: 0.0.40
codegen_flags: <defaults>
</compile_context>

<pallas_src>
import functools

import numpy as np

import jax
import jax.numpy as jnp
from jax.experimental import pallas as pl
from jax.experimental.pallas import tpu as pltpu


def _round_up(x, m):
    return ((x + m - 1) // m) * m


# ----------------------------------------------------------------------------
# Kernel: 3 matmuls + 2 (or 3 with logreg) sigmoids, no per-rule loop.
# ----------------------------------------------------------------------------
def _rule_arch_kernel(x_ref, wprop_ref, bprop_ref, conj_ref, qbias_ref,
                      wrw_ref, brw_ref, out_ref, *, logreg):
    cdt = wprop_ref.dtype                       # compute dtype (bf16 or f32)
    x = x_ref[...].astype(cdt)                  # (TB, D)

    # 1) all rules' propositions in one MXU pass: (TB, D) @ (D, RP_pad)
    z = jnp.dot(x, wprop_ref[...], preferred_element_type=jnp.float32)
    z = z + bprop_ref[...]                      # f32 bias
    s = jax.nn.sigmoid(z)                       # (TB, RP_pad), f32

    # 2) block-diagonal conjunction matmul; q_a folded into C,
    #    (q_b - q_a*sum(c)) folded into qbias  ->  q == q_a*((s-1)@c) + q_b.
    #    TODO(synk): for very large num_rules (>~8) an elementwise
    #    multiply + per-rule lane reduction (VPU/XLU) wastes fewer MXU cycles.
    q = jnp.dot(s.astype(cdt), conj_ref[...], preferred_element_type=jnp.float32)
    qa = jax.nn.sigmoid(q + qbias_ref[...])     # (TB, R_pad)

    # 3) rule weights with pre-summed bias: (TB, R_pad) @ (R_pad, O_pad)
    out = jnp.dot(qa.astype(cdt), wrw_ref[...], preferred_element_type=jnp.float32)
    out = out + brw_ref[...]
    if logreg:
        out = jax.nn.sigmoid(out)
    out_ref[...] = out.astype(out_ref.dtype)


# ----------------------------------------------------------------------------
# Wrapper: batch-tiled (parallel) grid, resident single-buffered weights.
# ----------------------------------------------------------------------------
def _bytes_of(arrs):
    return sum(int(a.size) * a.dtype.itemsize for a in arrs)


def _physical_vmem_bytes():
    try:
        return int(pltpu.get_tpu_info().vmem_capacity_bytes)
    except Exception:
        return 64 * 1024 * 1024   # v7x-safe fallback


def _pick_tile_b(batch, d, rp_pad, r_pad, out_pad, weight_bytes, vmem_cap):
    ladder = (2048, 1024, 512, 256, 128, 64, 32, 16, 8)
    best = 8
    for t in ladder:
        # weights (single-buffered) + double-buffered x/out tiles + temporaries
        need = (weight_bytes
                + 2 * t * (d + out_pad) * 4
                + t * (2 * rp_pad + 2 * r_pad) * 4)
        if need > vmem_cap:
            continue
        # keep >=2 grid steps when possible so both v7x TensorCores get work
        if t >= 16 and pl.cdiv(batch, t) < 2:
            continue
        best = t
        break
    return best


def rule_architecture_forward(xin, packed, *, regression_type="logreg",
                              tile_b=None):
    """xin: (B, D) f32.  packed: output of pack_params()."""
    wprop, bprop, conj, qbias, wrw, brw, out_dim = packed
    xin = jnp.asarray(xin, jnp.float32)
    batch, d = xin.shape
    rp_pad = wprop.shape[1]
    r_pad = conj.shape[1]
    out_pad = wrw.shape[1]
    logreg = regression_type == "logreg"

    weight_arrs = (wprop, bprop, conj, qbias, wrw, brw)
    weight_bytes = _bytes_of(weight_arrs)
    vmem_cap = int(_physical_vmem_bytes() * 0.75)

    if tile_b is None:
        tile_b = _pick_tile_b(batch, d, rp_pad, r_pad, out_pad,
                              weight_bytes, vmem_cap)
    tile_b = max(8, _round_up(int(tile_b), 8))

    n_steps = pl.cdiv(batch, tile_b)
    batch_pad = n_steps * tile_b
    x_pad = xin if batch_pad == batch else jnp.pad(
        xin, ((0, batch_pad - batch), (0, 0)))

    need_bytes = (weight_bytes
                  + 2 * tile_b * (d + out_pad) * 4
                  + tile_b * (2 * rp_pad + 2 * r_pad) * 4)
    vmem_limit = int(min(vmem_cap, max(need_bytes + (8 << 20), 24 << 20)))

    kernel = functools.partial(_rule_arch_kernel, logreg=logreg)

    flops = 2 * batch_pad * (d * rp_pad + rp_pad * r_pad + r_pad * out_pad)
    transcendentals = batch_pad * (rp_pad + r_pad + (out_pad if logreg else 0))
    bytes_accessed = (4 * batch_pad * (d + out_pad) + weight_bytes)

    def _call(single_buffer_weights):
        if single_buffer_weights:
            wkw = dict(pipeline_mode=pl.Buffered(1))
        else:
            wkw = {}
        in_specs = [
            pl.BlockSpec((tile_b, d), lambda i: (i, 0)),                   # x
            pl.BlockSpec((d, rp_pad), lambda i: (0, 0), **wkw),            # Wp_all
            pl.BlockSpec((1, rp_pad), lambda i: (0, 0), **wkw),            # bp_all
            pl.BlockSpec((rp_pad, r_pad), lambda i: (0, 0), **wkw),        # C (q_a folded)
            pl.BlockSpec((1, r_pad), lambda i: (0, 0), **wkw),             # qbias
            pl.BlockSpec((r_pad, out_pad), lambda i: (0, 0), **wkw),       # Wrw
            pl.BlockSpec((1, out_pad), lambda i: (0, 0), **wkw),           # sum(brw)
        ]
        return pl.pallas_call(
            kernel,
            out_shape=jax.ShapeDtypeStruct((batch_pad, out_pad), jnp.float32),
            grid_spec=pltpu.PrefetchScalarGridSpec(
                num_scalar_prefetch=0,
                grid=(n_steps,),
                in_specs=in_specs,
                out_specs=pl.BlockSpec((tile_b, out_pad), lambda i: (i, 0)),
            ),
            compiler_params=pltpu.CompilerParams(
                dimension_semantics=("parallel",),
                vmem_limit_bytes=vmem_limit,
            ),
            cost_estimate=pl.CostEstimate(flops=flops,
                                          transcendentals=transcendentals,
                                          bytes_accessed=bytes_accessed),
        )(x_pad, wprop, bprop, conj, qbias, wrw, brw)

    try:
        out_full = _call(True)
    except Exception:
        # pipeline_mode=pl.Buffered(1) not supported on this JAX build.
        out_full = _call(False)

    return out_full[:batch, :out_dim]


# ----------------------------------------------------------------------------
# Deterministic per-rule parameters mirroring RuleArchitecture.__init__
#   propositions : Linear(D, P)  -> weight (P, D), bias (P,)
#   conjunctions : Linear(P, 1)  -> weight in {0,1}
#   rule_weights : Linear(1, O)  -> weight (O,), bias (O,)
# ----------------------------------------------------------------------------
def make_raw_params(key, input_size, output_size, conditions_size):
    raw = []
    bound_p = 1.0 / (float(input_size) ** 0.5)
    for num_propos in conditions_size:
        key, k1, k2, k3, k4, k5 = jax.random.split(key, 6)
        raw.append({
            "w_prop": jax.random.uniform(k1, (num_propos, input_size),
                                         minval=-bound_p, maxval=bound_p,
                                         dtype=jnp.float32),
            "b_prop": jax.random.uniform(k2, (num_propos,),
                                         minval=-bound_p, maxval=bound_p,
                                         dtype=jnp.float32),
            "w_conj": jax.random.randint(k3, (num_propos,), 0, 2)
                                .astype(jnp.float32),
            "w_rw": jax.random.uniform(k4, (output_size,), minval=-1.0,
                                       maxval=1.0, dtype=jnp.float32),
            "b_rw": jax.random.uniform(k5, (output_size,), minval=-1.0,
                                       maxval=1.0, dtype=jnp.float32),
        })
    return raw


# ----------------------------------------------------------------------------
# Pack-time fusion (host-side, concrete values):
#   * prune propositions with conjunction weight == 0
#   * pad RP and out_dim to lane multiples (128), rules to a sublane multiple
#   * fold q_a into C and (q_b - q_a*csum) into a per-rule bias
#   * optionally store matmul operands in bf16 (MXU-native)
# ----------------------------------------------------------------------------
def pack_params(raw, *, q_a=1.0, q_b=0.0, compute_dtype=jnp.bfloat16,
                lane_multiple=128):
    num_rules = len(raw)
    d = int(raw[0]["w_prop"].shape[1])
    out_dim = int(raw[0]["w_rw"].shape[0])

    kept_w, kept_b, kept_c, rule_of_col = [], [], [], []
    csum = np.zeros((num_rules,), np.float32)
    for r_idx, r in enumerate(raw):
        w = np.asarray(r["w_prop"], np.float32)          # (P, D)
        b = np.asarray(r["b_prop"], np.float32)          # (P,)
        c = np.asarray(r["w_conj"], np.float32)          # (P,)
        csum[r_idx] = float(c.sum())
        keep = np.nonzero(c != 0.0)[0]                   # prune dead props
        for p in keep:
            kept_w.append(w[p])
            kept_b.append(float(b[p]))
            kept_c.append(float(c[p]))
            rule_of_col.append(r_idx)

    rp_active = len(kept_w)
    rp_pad = max(lane_multiple, _round_up(max(rp_active, 1), lane_multiple))
    r_pad = _round_up(num_rules, 8)
    out_pad = _round_up(out_dim, 128)

    wprop = np.zeros((d, rp_pad), np.float32)
    bprop = np.zeros((1, rp_pad), np.float32)
    conj = np.zeros((rp_pad, r_pad), np.float32)
    if rp_active:
        wprop[:, :rp_active] = np.stack(kept_w, axis=1)
        bprop[0, :rp_active] = np.asarray(kept_b, np.float32)
        for j in range(rp_active):
            conj[j, rule_of_col[j]] = q_a * kept_c[j]     # q_a folded into C

    qbias = np.zeros((1, r_pad), np.float32)
    qbias[0, :num_rules] = q_b - q_a * csum               # (s-1)@c identity

    wrw = np.zeros((r_pad, out_pad), np.float32)
    brw = np.zeros((1, out_pad), np.float32)
    for r_idx, r in enumerate(raw):
        wrw[r_idx, :out_dim] = np.asarray(r["w_rw"], np.float32)
        brw[0, :out_dim] += np.asarray(r["b_rw"], np.float32)

    cdt = compute_dtype
    return (jnp.asarray(wprop, cdt),          # matmul operand
            jnp.asarray(bprop, jnp.float32),  # f32 bias
            jnp.asarray(conj, cdt),           # matmul operand
            jnp.asarray(qbias, jnp.float32),  # f32 bias
            jnp.asarray(wrw, cdt),            # matmul operand
            jnp.asarray(brw, jnp.float32),    # f32 bias
            out_dim)


# ----------------------------------------------------------------------------
# Pure-JAX reference on the RAW (unpruned, per-rule) params — mirrors the
# PyTorch forward and validates pruning/padding/folding.
# ----------------------------------------------------------------------------
def reference_forward(xin, raw, q_a=1.0, q_b=0.0, regression_type="logreg"):
    xout = jnp.zeros((xin.shape[0], raw[0]["w_rw"].shape[0]), jnp.float32)
    for r in raw:
        z = xin @ r["w_prop"].T + r["b_prop"][None, :]
        s = jax.nn.sigmoid(z) - 1.0
        q = s @ r["w_conj"][:, None]                          # (B, 1)
        qa = jax.nn.sigmoid(q_a * q + q_b)
        xout = xout + qa * r["w_rw"][None, :] + r["b_rw"][None, :]
    if regression_type == "logreg":
        xout = jax.nn.sigmoid(xout)
    return xout


if __name__ == "__main__":
    # Small shapes consistent with the module's forward:
    #   xin: (batch=16, input_size=32) -> xout: (16, output_size=4)
    batch = 16
    input_size = 32
    output_size = 4
    conditions_size = [5, 3]   # unequal rule sizes -> exercises pruning/packing

    key = jax.random.PRNGKey(0)
    k_x, k_p = jax.random.split(key)
    xin = jax.random.normal(k_x, (batch, input_size), dtype=jnp.float32)
    raw = make_raw_params(k_p, input_size, output_size, conditions_size)

    ref = reference_forward(xin, raw, q_a=1.0, q_b=0.0,
                            regression_type="logreg")

    # f32 packed weights -> exact (fp tolerance) match; explicit tile_b=8
    # exercises a 2-step parallel grid plus the batch/out padding path.
    packed_f32 = pack_params(raw, q_a=1.0, q_b=0.0,
                             compute_dtype=jnp.float32)
    out_f32 = rule_architecture_forward(xin, packed_f32,
                                        regression_type="logreg", tile_b=8)
    out_f32 = jax.block_until_ready(out_f32)
    assert out_f32.shape == (batch, output_size)
    assert jnp.allclose(out_f32, ref, atol=1e-5, rtol=1e-5), \
        "f32 kernel mismatch vs reference"

    # bf16 packed weights (MXU-native, f32 accumulation) -> looser tolerance.
    packed_bf16 = pack_params(raw, q_a=1.0, q_b=0.0,
                              compute_dtype=jnp.bfloat16)
    out_bf16 = rule_architecture_forward(xin, packed_bf16,
                                         regression_type="logreg")
    out_bf16 = jax.block_until_ready(out_bf16)
    assert out_bf16.shape == (batch, output_size)
    assert jnp.allclose(out_bf16, ref, atol=3e-2, rtol=3e-2), \
        "bf16 kernel mismatch vs reference"

    print("KERNEL_OK")
</pallas_src>

<mosaic_0001>
module attributes {stable_mosaic.version = 11 : i64} {
  func.func @_rule_arch_kernel(%arg0: i32, %arg1: memref<8x32xf32, #tpu.memory_space<vmem>>, %arg2: memref<32x128xf32, #tpu.memory_space<vmem>>, %arg3: memref<1x128xf32, #tpu.memory_space<vmem>>, %arg4: memref<128x8xf32, #tpu.memory_space<vmem>>, %arg5: memref<1x8xf32, #tpu.memory_space<vmem>>, %arg6: memref<8x128xf32, #tpu.memory_space<vmem>>, %arg7: memref<1x128xf32, #tpu.memory_space<vmem>>, %arg8: memref<8x128xf32, #tpu.memory_space<vmem>>) attributes {dimension_semantics = [#tpu.dimension_semantics<parallel>], iteration_bounds = array<i64: 2>, scalar_prefetch = 0 : i64, scratch_operands = 0 : i64, tpu.core_type = #tpu.core_type<tc>, window_params = [{transform_indices = @transform_0, window_bounds = array<i64: 8, 32>}, {pipeline_mode = #tpu.pipeline_mode<synchronous>, transform_indices = @transform_1, window_bounds = array<i64: 32, 128>}, {pipeline_mode = #tpu.pipeline_mode<synchronous>, transform_indices = @transform_2, window_bounds = array<i64: 1, 128>}, {pipeline_mode = #tpu.pipeline_mode<synchronous>, transform_indices = @transform_3, window_bounds = array<i64: 128, 8>}, {pipeline_mode = #tpu.pipeline_mode<synchronous>, transform_indices = @transform_4, window_bounds = array<i64: 1, 8>}, {pipeline_mode = #tpu.pipeline_mode<synchronous>, transform_indices = @transform_5, window_bounds = array<i64: 8, 128>}, {pipeline_mode = #tpu.pipeline_mode<synchronous>, transform_indices = @transform_6, window_bounds = array<i64: 1, 128>}, {transform_indices = @transform_7, window_bounds = array<i64: 8, 128>}]} {
    %c0 = arith.constant 0 : index
    %c0_0 = arith.constant 0 : index
    %0 = vector.load %arg1[%c0, %c0_0] : memref<8x32xf32, #tpu.memory_space<vmem>>, vector<8x32xf32>
    %c0_1 = arith.constant 0 : index
    %c0_2 = arith.constant 0 : index
    %1 = vector.load %arg2[%c0_1, %c0_2] : memref<32x128xf32, #tpu.memory_space<vmem>>, vector<32x128xf32>
    %cst = arith.constant dense<0.000000e+00> : vector<8x128xf32>
    %2 = tpu.matmul %0, %1, %cst {dimension_numbers = #tpu.dot_dimension_numbers<[1], [0], [0], [1], [0, 0, 1, 1], [], []>} : vector<8x32xf32>, vector<32x128xf32>, vector<8x128xf32> -> vector<8x128xf32>
    %c0_3 = arith.constant 0 : index
    %c0_4 = arith.constant 0 : index
    %3 = vector.load %arg3[%c0_3, %c0_4] : memref<1x128xf32, #tpu.memory_space<vmem>>, vector<1x128xf32>
    %4 = vector.broadcast %3 : vector<1x128xf32> to vector<8x128xf32>
    %5 = arith.addf %2, %4 : vector<8x128xf32>
    %6 = arith.negf %5 : vector<8x128xf32>
    %7 = math.exp %6 : vector<8x128xf32>
    %cst_5 = arith.constant 1.000000e+00 : f32
    %8 = vector.broadcast %cst_5 : f32 to vector<8x128xf32>
    %9 = arith.addf %8, %7 : vector<8x128xf32>
    %10 = arith.divf %8, %9 : vector<8x128xf32>
    %c0_6 = arith.constant 0 : index
    %c0_7 = arith.constant 0 : index
    %11 = vector.load %arg4[%c0_6, %c0_7] : memref<128x8xf32, #tpu.memory_space<vmem>>, vector<128x8xf32>
    %cst_8 = arith.constant dense<0.000000e+00> : vector<8x8xf32>
    %12 = tpu.matmul %10, %11, %cst_8 {dimension_numbers = #tpu.dot_dimension_numbers<[1], [0], [0], [1], [0, 0, 1, 1], [], []>} : vector<8x128xf32>, vector<128x8xf32>, vector<8x8xf32> -> vector<8x8xf32>
    %c0_9 = arith.constant 0 : index
    %c0_10 = arith.constant 0 : index
    %13 = vector.load %arg5[%c0_9, %c0_10] : memref<1x8xf32, #tpu.memory_space<vmem>>, vector<1x8xf32>
    %14 = vector.broadcast %13 : vector<1x8xf32> to vector<8x8xf32>
    %15 = arith.addf %12, %14 : vector<8x8xf32>
    %16 = arith.negf %15 : vector<8x8xf32>
    %17 = math.exp %16 : vector<8x8xf32>
    %cst_11 = arith.constant 1.000000e+00 : f32
    %18 = vector.broadcast %cst_11 : f32 to vector<8x8xf32>
    %19 = arith.addf %18, %17 : vector<8x8xf32>
    %20 = arith.divf %18, %19 : vector<8x8xf32>
    %c0_12 = arith.constant 0 : index
    %c0_13 = arith.constant 0 : index
    %21 = vector.load %arg6[%c0_12, %c0_13] : memref<8x128xf32, #tpu.memory_space<vmem>>, vector<8x128xf32>
    %cst_14 = arith.constant dense<0.000000e+00> : vector<8x128xf32>
    %22 = tpu.matmul %20, %21, %cst_14 {dimension_numbers = #tpu.dot_dimension_numbers<[1], [0], [0], [1], [0, 0, 1, 1], [], []>} : vector<8x8xf32>, vector<8x128xf32>, vector<8x128xf32> -> vector<8x128xf32>
    %c0_15 = arith.constant 0 : index
    %c0_16 = arith.constant 0 : index
    %23 = vector.load %arg7[%c0_15, %c0_16] : memref<1x128xf32, #tpu.memory_space<vmem>>, vector<1x128xf32>
    %24 = vector.broadcast %23 : vector<1x128xf32> to vector<8x128xf32>
    %25 = arith.addf %22, %24 : vector<8x128xf32>
    %26 = arith.negf %25 : vector<8x128xf32>
    %27 = math.exp %26 : vector<8x128xf32>
    %cst_17 = arith.constant 1.000000e+00 : f32
    %28 = vector.broadcast %cst_17 : f32 to vector<8x128xf32>
    %29 = arith.addf %28, %27 : vector<8x128xf32>
    %30 = arith.divf %28, %29 : vector<8x128xf32>
    %c0_18 = arith.constant 0 : index
    %c0_19 = arith.constant 0 : index
    %31 = vector.load %arg8[%c0_18, %c0_19] : memref<8x128xf32, #tpu.memory_space<vmem>>, vector<8x128xf32>
    tpu.vector_store %arg8[%c0_18, %c0_19], %30 {strides = array<i32>} : memref<8x128xf32, #tpu.memory_space<vmem>>, vector<8x128xf32>,
    return
  }
  func.func @transform_0(%arg0: i32) -> (i32, i32) {
    %c0_i32 = arith.constant 0 : i32
    %c0_i32_0 = arith.constant 0 : i32
    return %arg0, %c0_i32 : i32, i32
  }
  func.func @transform_1(%arg0: i32) -> (i32, i32) {
    %c0_i32 = arith.constant 0 : i32
    %c0_i32_0 = arith.constant 0 : i32
    %c0_i32_1 = arith.constant 0 : i32
    return %c0_i32, %c0_i32_0 : i32, i32
  }
  func.func @transform_2(%arg0: i32) -> (i32, i32) {
    %c0_i32 = arith.constant 0 : i32
    %c0_i32_0 = arith.constant 0 : i32
    %c0_i32_1 = arith.constant 0 : i32
    return %c0_i32, %c0_i32_0 : i32, i32
  }
  func.func @transform_3(%arg0: i32) -> (i32, i32) {
    %c0_i32 = arith.constant 0 : i32
    %c0_i32_0 = arith.constant 0 : i32
    %c0_i32_1 = arith.constant 0 : i32
    return %c0_i32, %c0_i32_0 : i32, i32
  }
  func.func @transform_4(%arg0: i32) -> (i32, i32) {
    %c0_i32 = arith.constant 0 : i32
    %c0_i32_0 = arith.constant 0 : i32
    %c0_i32_1 = arith.constant 0 : i32
    return %c0_i32, %c0_i32_0 : i32, i32
  }
  func.func @transform_5(%arg0: i32) -> (i32, i32) {
    %c0_i32 = arith.constant 0 : i32
    %c0_i32_0 = arith.constant 0 : i32
    %c0_i32_1 = arith.constant 0 : i32
    return %c0_i32, %c0_i32_0 : i32, i32
  }
  func.func @transform_6(%arg0: i32) -> (i32, i32) {
    %c0_i32 = arith.constant 0 : i32
    %c0_i32_0 = arith.constant 0 : i32
    %c0_i32_1 = arith.constant 0 : i32
    return %c0_i32, %c0_i32_0 : i32, i32
  }
  func.func @transform_7(%arg0: i32) -> (i32, i32) {
    %c0_i32 = arith.constant 0 : i32
    %c0_i32_0 = arith.constant 0 : i32
    return %arg0, %c0_i32 : i32, i32
  }
}

module attributes {stable_mosaic.version = 11 : i64} {
  func.func @_rule_arch_kernel(%arg0: i32, %arg1: memref<8x32xf32, #tpu.memory_space<vmem>>, %arg2: memref<32x128xf32, #tpu.memory_space<vmem>>, %arg3: memref<1x128xf32, #tpu.memory_space<vmem>>, %arg4: memref<128x8xf32, #tpu.memory_space<vmem>>, %arg5: memref<1x8xf32, #tpu.memory_space<vmem>>, %arg6: memref<8x128xf32, #tpu.memory_space<vmem>>, %arg7: memref<1x128xf32, #tpu.memory_space<vmem>>, %arg8: memref<8x128xf32, #tpu.memory_space<vmem>>) attributes {dimension_semantics = [#tpu.dimension_semantics<parallel>], iteration_bounds = array<i64: 2>, scalar_prefetch = 0 : i64, scratch_operands = 0 : i64, tpu.core_type = #tpu.core_type<tc>, window_params = [{transform_indices = @transform_0, window_bounds = array<i64: 8, 32>}, {pipeline_mode = #tpu.pipeline_mode<synchronous>, transform_indices = @transform_1, window_bounds = array<i64: 32, 128>}, {pipeline_mode = #tpu.pipeline_mode<synchronous>, transform_indices = @transform_2, window_bounds = array<i64: 1, 128>}, {pipeline_mode = #tpu.pipeline_mode<synchronous>, transform_indices = @transform_3, window_bounds = array<i64: 128, 8>}, {pipeline_mode = #tpu.pipeline_mode<synchronous>, transform_indices = @transform_4, window_bounds = array<i64: 1, 8>}, {pipeline_mode = #tpu.pipeline_mode<synchronous>, transform_indices = @transform_5, window_bounds = array<i64: 8, 128>}, {pipeline_mode = #tpu.pipeline_mode<synchronous>, transform_indices = @transform_6, window_bounds = array<i64: 1, 128>}, {transform_indices = @transform_7, window_bounds = array<i64: 8, 128>}]} {
    %c0 = arith.constant 0 : index
    %c0_0 = arith.constant 0 : index
    %0 = vector.load %arg1[%c0, %c0_0] : memref<8x32xf32, #tpu.memory_space<vmem>>, vector<8x32xf32>
    %c0_1 = arith.constant 0 : index
    %c0_2 = arith.constant 0 : index
    %1 = vector.load %arg2[%c0_1, %c0_2] : memref<32x128xf32, #tpu.memory_space<vmem>>, vector<32x128xf32>
    %cst = arith.constant dense<0.000000e+00> : vector<8x128xf32>
    %2 = tpu.matmul %0, %1, %cst {dimension_numbers = #tpu.dot_dimension_numbers<[1], [0], [0], [1], [0, 0, 1, 1], [], []>} : vector<8x32xf32>, vector<32x128xf32>, vector<8x128xf32> -> vector<8x128xf32>
    %c0_3 = arith.constant 0 : index
    %c0_4 = arith.constant 0 : index
    %3 = vector.load %arg3[%c0_3, %c0_4] : memref<1x128xf32, #tpu.memory_space<vmem>>, vector<1x128xf32>
    %4 = vector.broadcast %3 : vector<1x128xf32> to vector<8x128xf32>
    %5 = arith.addf %2, %4 : vector<8x128xf32>
    %6 = arith.negf %5 : vector<8x128xf32>
    %7 = math.exp %6 : vector<8x128xf32>
    %cst_5 = arith.constant 1.000000e+00 : f32
    %8 = vector.broadcast %cst_5 : f32 to vector<8x128xf32>
    %9 = arith.addf %8, %7 : vector<8x128xf32>
    %10 = arith.divf %8, %9 : vector<8x128xf32>
    %c0_6 = arith.constant 0 : index
    %c0_7 = arith.constant 0 : index
    %11 = vector.load %arg4[%c0_6, %c0_7] : memref<128x8xf32, #tpu.memory_space<vmem>>, vector<128x8xf32>
    %cst_8 = arith.constant dense<0.000000e+00> : vector<8x8xf32>
    %12 = tpu.matmul %10, %11, %cst_8 {dimension_numbers = #tpu.dot_dimension_numbers<[1], [0], [0], [1], [0, 0, 1, 1], [], []>} : vector<8x128xf32>, vector<128x8xf32>, vector<8x8xf32> -> vector<8x8xf32>
    %c0_9 = arith.constant 0 : index
    %c0_10 = arith.constant 0 : index
    %13 = vector.load %arg5[%c0_9, %c0_10] : memref<1x8xf32, #tpu.memory_space<vmem>>, vector<1x8xf32>
    %14 = vector.broadcast %13 : vector<1x8xf32> to vector<8x8xf32>
    %15 = arith.addf %12, %14 : vector<8x8xf32>
    %16 = arith.negf %15 : vector<8x8xf32>
    %17 = math.exp %16 : vector<8x8xf32>
    %cst_11 = arith.constant 1.000000e+00 : f32
    %18 = vector.broadcast %cst_11 : f32 to vector<8x8xf32>
    %19 = arith.addf %18, %17 : vector<8x8xf32>
    %20 = arith.divf %18, %19 : vector<8x8xf32>
    %c0_12 = arith.constant 0 : index
    %c0_13 = arith.constant 0 : index
    %21 = vector.load %arg6[%c0_12, %c0_13] : memref<8x128xf32, #tpu.memory_space<vmem>>, vector<8x128xf32>
    %cst_14 = arith.constant dense<0.000000e+00> : vector<8x128xf32>
    %22 = tpu.matmul %20, %21, %cst_14 {dimension_numbers = #tpu.dot_dimension_numbers<[1], [0], [0], [1], [0, 0, 1, 1], [], []>} : vector<8x8xf32>, vector<8x128xf32>, vector<8x128xf32> -> vector<8x128xf32>
    %c0_15 = arith.constant 0 : index
    %c0_16 = arith.constant 0 : index
    %23 = vector.load %arg7[%c0_15, %c0_16] : memref<1x128xf32, #tpu.memory_space<vmem>>, vector<1x128xf32>
    %24 = vector.broadcast %23 : vector<1x128xf32> to vector<8x128xf32>
    %25 = arith.addf %22, %24 : vector<8x128xf32>
    %26 = arith.negf %25 : vector<8x128xf32>
    %27 = math.exp %26 : vector<8x128xf32>
    %cst_17 = arith.constant 1.000000e+00 : f32
    %28 = vector.broadcast %cst_17 : f32 to vector<8x128xf32>
    %29 = arith.addf %28, %27 : vector<8x128xf32>
    %30 = arith.divf %28, %29 : vector<8x128xf32>
    %c0_18 = arith.constant 0 : index
    %c0_19 = arith.constant 0 : index
    %31 = vector.load %arg8[%c0_18, %c0_19] : memref<8x128xf32, #tpu.memory_space<vmem>>, vector<8x128xf32>
    tpu.vector_store %arg8[%c0_18, %c0_19], %30 {strides = array<i32>} : memref<8x128xf32, #tpu.memory_space<vmem>>, vector<8x128xf32>,
    return
  }
  func.func @transform_0(%arg0: i32) -> (i32, i32) {
    %c0_i32 = arith.constant 0 : i32
    %c0_i32_0 = arith.constant 0 : i32
    return %arg0, %c0_i32 : i32, i32
  }
  func.func @transform_1(%arg0: i32) -> (i32, i32) {
    %c0_i32 = arith.constant 0 : i32
    %c0_i32_0 = arith.constant 0 : i32
    %c0_i32_1 = arith.constant 0 : i32
    return %c0_i32, %c0_i32_0 : i32, i32
  }
  func.func @transform_2(%arg0: i32) -> (i32, i32) {
    %c0_i32 = arith.constant 0 : i32
    %c0_i32_0 = arith.constant 0 : i32
    %c0_i32_1 = arith.constant 0 : i32
    return %c0_i32, %c0_i32_0 : i32, i32
  }
  func.func @transform_3(%arg0: i32) -> (i32, i32) {
    %c0_i32 = arith.constant 0 : i32
    %c0_i32_0 = arith.constant 0 : i32
    %c0_i32_1 = arith.constant 0 : i32
    return %c0_i32, %c0_i32_0 : i32, i32
  }
  func.func @transform_4(%arg0: i32) -> (i32, i32) {
    %c0_i32 = arith.constant 0 : i32
    %c0_i32_0 = arith.constant 0 : i32
    %c0_i32_1 = arith.constant 0 : i32
    return %c0_i32, %c0_i32_0 : i32, i32
  }
  func.func @transform_5(%arg0: i32) -> (i32, i32) {
    %c0_i32 = arith.constant 0 : i32
    %c0_i32_0 = arith.constant 0 : i32
    %c0_i32_1 = arith.constant 0 : i32
    return %c0_i32, %c0_i32_0 : i32, i32
  }
  func.func @transform_6(%arg0: i32) -> (i32, i32) {
    %c0_i32 = arith.constant 0 : i32
    %c0_i32_0 = arith.constant 0 : i32
    %c0_i32_1 = arith.constant 0 : i32
    return %c0_i32, %c0_i32_0 : i32, i32
  }
  func.func @transform_7(%arg0: i32) -> (i32, i32) {
    %c0_i32 = arith.constant 0 : i32
    %c0_i32_0 = arith.constant 0 : i32
    return %arg0, %c0_i32 : i32, i32
  }
}

</mosaic_0001>

<bundles_post_ra>
// kernel: tpu_custom_call.1
= control target key start
LH: loop header
LB: loop body
LE: loop exit
PB: predicated region body
PF: predicated region fallthrough
CT: control target
= control target key end

     0   :  { %12 = vsyncpa [#allocation3], 0  ;;  %s1087_s0 = inlined_call_operand.vmem [shape: f32[16,32], index: 0, kind: input, shape index: {}]   ;;  %s1088_s1 = inlined_call_operand.vmem [shape: f32[32,128], index: 1, kind: input, shape index: {}]   ;;  %s1089_s2 = inlined_call_operand.vmem [shape: f32[1,128], index: 2, kind: input, shape index: {}]   ;;  %s1090_s3 = inlined_call_operand.vmem [shape: f32[128,8], index: 3, kind: input, shape index: {}]   ;;  %s1091_s4 = inlined_call_operand.vmem [shape: f32[1,8], index: 4, kind: input, shape index: {}]   ;;  %s1092_s5 = inlined_call_operand.vmem [shape: f32[8,128], index: 5, kind: input, shape index: {}]   ;;  %s1093_s6 = inlined_call_operand.vmem [shape: f32[1,128], index: 6, kind: input, shape index: {}]   ;;  %s1094_s7 = inlined_call_operand.hbm [shape: f32[16,128], index: 7, kind: output, shape index: {}]  }
   0x1   :  { %14 = vsyncpa [#allocation3 + $0x1], 0  ;;  %s912_s24 = smov 0   ;;  %s914_s25 = smov 0  }
   0x2   :  { %s916_s26 = smov 0   ;;  %s918_s27 = smov 0  }
   0x3 LB: > { %s933_s28 = sadd.s32 4294967295, %s866_s27   ;;  %s627_s29 = sadd.s32 4294967294, %s866_s27   ;;  %s866_s27 = sphi %s918_s27, %s1100_s27   ;;  %s862_s26 = sphi %s916_s26, %s1099_s26   ;;  %s858_s25 = sphi %s914_s25, %s1098_s25   ;;  %s854_s24 = sphi %s912_s24, %s1097_s24  }
   0x4   : > { %s937_s30 = sadd.s32 1, %s866_s27   ;;  %s179_s8 = sadd.s32 1, %s862_s26 }
   0x5   : > { %s176_s9 = ssub.s32 %s866_s27, %s937_s30  ;;  %p189_p0 = scmp.ne.s32.totalorder %s862_s26, %s858_s25 }
   0x6   : > { %p177_p1 = scmp.eq.s32.totalorder %s176_s9, 0  ;;  %p190_p2 = scmp.eq.s32.totalorder %s933_s28, 1 }
   0x7   : > { %p195_p3 = scmp.ne.s32.totalorder %s858_s25, %s854_s24  ;;  %p196_p4 = scmp.eq.s32.totalorder %s627_s29, 1 }
   0x8   : > { %s948_s10 = scalar_select %p177_p1, %s862_s26, %s179_s8  }
   0x9   : > { %p950_p5 = por %p190_p2, %p189_p0  ;;  %p954_p6 = por %p196_p4, %p195_p3 }
   0xa   : > { %p630_p7 = scmp.ge.s32.totalorder %s866_s27, 1  ;;  %p239_p8 = scmp.lt.s32.totalorder %s866_s27, 3 }
   0xc   : > { %p240_p9 = pnand %p630_p7, %p239_p8 }
   0xd   : > { %v275_v0 = vld [vmem:[%s1088_s1] sm:$0xff] (!%p240_p9)  ;;  %v276_v1 = vld [vmem:[%s1088_s1 + $0x8] sm:$0xff] (!%p240_p9)  ;;  %v277_v2 = vld [vmem:[%s1088_s1 + $0x10] sm:$0xff] (!%p240_p9)  ;;  %v868_v3 = vmov (!%p240_p9), 0.0|0.0   ;;  %vm869_vm0 = vmmov (!%p240_p9), 0   ;;  %v870_v6 = vmov (!%p240_p9), 0.0  }
   0xe   : > { %243 = sbr.rel (%p240_p9) target bundleno = 760 (0x2f8), region = 48  ;;  %720 = vmatprep.subr.bf16.mxu0 (!%p240_p9), %v868_v3  ;;  %v721_v4 = vpack.c.bf16 (!%p240_p9), %v276_v1, %v275_v0  ;;  %v278_v5 = vld [vmem:[%s1088_s1 + $0x18] sm:$0xff] (!%p240_p9)  ;;  %677 = vmatprep.mubr.msk.f32.mxu0 (!%p240_p9), %vm869_vm0, %v870_v6  ;;  %p270_p10 = scmp.lt.s32.totalorder (!%p240_p9), %s933_s28, 1  ;;  %v366_v7 = vld [vmem:[%s1090_s3] sm:$0xff] (!%p240_p9)  ;;  %v367_v8 = vld [vmem:[%s1090_s3 + $0x8] sm:$0xff] (!%p240_p9)  ;;  %vm286_vm1 = vcmask (!%p240_p9), 261120  }
   0xf   : > { %726 = vmatprep.subr.bf16.mxu1 (!%p240_p9), %v868_v3  ;;  %v727_v9 = vpack.c.bf16 (!%p240_p9), %v367_v8, %v366_v7  ;;  %712 = vmatprep.mubr.msk.f32.mxu1 (!%p240_p9), %vm869_vm0, %v870_v6  ;;  %v724_v10 = vpack.c.bf16 (!%p240_p9), %v278_v5, %v277_v2  ;;  %v368_v12 = vld [vmem:[%s1090_s3 + $0x10] sm:$0xff] (!%p240_p9)  ;;  %v369_v13 = vld [vmem:[%s1090_s3 + $0x18] sm:$0xff] (!%p240_p9)  ;;  %v370_v15 = vld [vmem:[%s1090_s3 + $0x20] sm:$0xff] (!%p240_p9)  ;;  %vm473_vm2 = vcmask (!%p240_p9), 64512   ;;  %s267_s29 = sand.u32 (!%p240_p9), 1, %s858_s25  }
  0x10   : > { %722 = vmatpush3.bf16.msra.mxu0 (!%p240_p9), %v721_v4  ;;  %v730_v14 = vpack.c.bf16 (!%p240_p9), %v369_v13, %v368_v12  ;;  %v371_v16 = vld [vmem:[%s1090_s3 + $0x28] sm:$0xff] (!%p240_p9)  ;;  %v372_v18 = vld [vmem:[%s1090_s3 + $0x30] sm:$0xff] (!%p240_p9)  ;;  %v373_v19 = vld [vmem:[%s1090_s3 + $0x38] sm:$0xff] (!%p240_p9)  ;;  %s555_s18 = scalar_lea.sflag (!%p240_p9), [#allocation3], %s267_s29 }
  0x11   : > { %723 = vmatprep.subr.bf16.mxu0 (!%p240_p9), %v868_v3  ;;  %728 = vmatpush3.bf16.msra.mxu1 (!%p240_p9), %v727_v9  ;;  %v733_v17 = vpack.c.bf16 (!%p240_p9), %v371_v16, %v370_v15  ;;  %v736_v20 = vpack.c.bf16 (!%p240_p9), %v373_v19, %v372_v18  ;;  %v374_v21 = vld [vmem:[%s1090_s3 + $0x40] sm:$0xff] (!%p240_p9)  ;;  %v375_v22 = vld [vmem:[%s1090_s3 + $0x48] sm:$0xff] (!%p240_p9)  ;;  %v376_v24 = vld [vmem:[%s1090_s3 + $0x50] sm:$0xff] (!%p240_p9) }
  0x12   : > { %729 = vmatprep.subr.bf16.mxu1 (!%p240_p9), %v868_v3  ;;  %v739_v23 = vpack.c.bf16 (!%p240_p9), %v375_v22, %v374_v21  ;;  %v377_v25 = vld [vmem:[%s1090_s3 + $0x58] sm:$0xff] (!%p240_p9)  ;;  %v378_v27 = vld [vmem:[%s1090_s3 + $0x60] sm:$0xff] (!%p240_p9)  ;;  %v379_v28 = vld [vmem:[%s1090_s3 + $0x68] sm:$0xff] (!%p240_p9) }
  0x13   : > { %v742_v26 = vpack.c.bf16 (!%p240_p9), %v377_v25, %v376_v24  ;;  %v745_v29 = vpack.c.bf16 (!%p240_p9), %v379_v28, %v378_v27  ;;  %v380_v30 = vld [vmem:[%s1090_s3 + $0x70] sm:$0xff] (!%p240_p9)  ;;  %v381_v31 = vld [vmem:[%s1090_s3 + $0x78] sm:$0xff] (!%p240_p9)  ;;  %v633_v33 = vld [vmem:[%s1089_s2] ss:$0 sm:$0xff] (!%p240_p9) }
  0x14   : > { %725 = vmatpush3.bf16.msra.mxu0 (!%p240_p9), %v724_v10  ;;  %v748_v32 = vpack.c.bf16 (!%p240_p9), %v381_v31, %v380_v30  ;;  %v465_v41 = vld [vmem:[%s1092_s5] sm:$0xff] (!%p240_p9) }
  0x15   : > { %s271_s8 = scalar_select %p270_p10, %s933_s28, 1  ;;  %715 = vmatprep.subr.mxu0 %v870_v6  ;;  %731 = vmatpush3.bf16.msra.mxu1 %v730_v14  ;;  %v636_v42 = vld [vmem:[%s1091_s4] ss:$0 sm:$0xff] }
  0x16   : > { %732 = vmatprep.subr.bf16.mxu1 %v868_v3  ;;  %v638_v50 = vld [vmem:[%s1093_s6] ss:$0 sm:$0xff] }
  0x17   : > { %s632_s9 = sshll.u32 %s271_s8, 3  ;;  %s631_s8 = sshll.u32 %s267_s29, 3 }
  0x18   : > { %s273_s15 = scalar_lea.vmem %s1087_s0, %s632_s9  ;;  %s642_s9 = sshll.u32 %s933_s28, 7 }
  0x19   : > { %v274_v11 = vld [vmem:[%s273_s15] sm:$0xff]  ;;  %734 = vmatpush3.bf16.msra.mxu1 %v733_v17  ;;  %s269_s13 = scalar_lea.vmem [#allocation2], %s631_s8  ;;  %s1045_s17 = scalar_lea.hbm %s1094_s7, %s642_s9 }
  0x1a   : > { %678 = vmatmul.mubr.msk.f32.vlgmr.msra.gmra.mrb[0].mxu0 %vm286_vm1, %v274_v11  ;;  %735 = vmatprep.subr.bf16.mxu1 %v868_v3  ;;  %s568_s14 = sshll.u32 %s269_s13, 4  ;;  %s871_s28 = smov [#allocation2]   ;;  %s1047_s14 = int_to_ptr.vmem [resolvable:$true] %s568_s14 }
  0x1b   : > { %717 = vmatprep.mubr.msk.f32.mxu0 %vm869_vm0, %v870_v6  ;;  %716 = vmatpush3.msra.mxu0 %v465_v41  ;;  %s804_s19 = scalar_lea.vmem %s1047_s14, 128  ;;  %s808_s20 = sshll.u32 %s871_s28, 4  ;;  %s809_s20 = int_to_ptr.vmem [resolvable:$false] %s808_s20 }
  0x1c   : > { %p805_p11 = scmp.ne.s32.totalorder %s1047_s14, %s804_s19  ;;  %s810_s21 = scalar_lea.vmem %s809_s20, 256 }
  0x1d   : > { %737 = vmatpush3.bf16.msra.mxu1 %v736_v20  ;;  %p811_p0 = scmp.lt.s32.totalorder %s1047_s14, %s809_s20  ;;  %p812_p1 = scmp.lt.s32.totalorder %s810_s21, %s804_s19 }
  0x1e   : > { %738 = vmatprep.subr.bf16.mxu1 %v868_v3  ;;  %p806_p12 = pnand %p805_p11, %p950_p5 }
  0x1f   : > { %p813_p2 = por %p812_p1, %p811_p0 }
  0x20   : > { %p807_p13 = pneg %p806_p12 }
  0x21   : > { %740 = vmatpush3.bf16.msra.mxu1 %v739_v23 }
  0x22   : > { %741 = vmatprep.subr.bf16.mxu1 %v868_v3  ;;  %p814_p3 = pnand %p813_p2, %p807_p13 }
  0x25   : > { %743 = vmatpush3.bf16.msra.mxu1 %v742_v26 }
  0x26   : > { %744 = vmatprep.subr.bf16.mxu1 %v868_v3 }
  0x29   : > { %746 = vmatpush3.bf16.msra.mxu1 %v745_v29 }
  0x2a   : > { %747 = vmatprep.subr.bf16.mxu1 %v868_v3 }
  0x2d   : > { %749 = vmatpush3.bf16.msra.mxu1 %v748_v32 }
  0xed   : > { %v356_v34 = vpop.f32.mrb[0].mxu0 }
  0xee   : > { %v357_v35 = vadd.f32 %v633_v33, %v356_v34  ;;  %v679_v36 = vpop.f32.mrb[1].mxu0 }
  0xf0   : > { %v635_v37 = vmul.f32 -1.442695, %v357_v35 }
  0xf2   : > { %792 = vpow2.f32 %v635_v37 }
  0xfc   : > { %v793_v38 = vpop.eup %792 }
  0xfd   : > { %v363_v39 = vadd.f32 1.0, %v793_v38 }
  0xff   : > { %794 = vrcp.f32 %v363_v39 }
 0x109   : > { %v795_v40 = vpop.eup %794 }
 0x10a   : > { %713 = vmatmul.mubr.f32.vlgmr.msra.gmra.mrb[0].mxu1 %v795_v40 }
 0x1dd   : > { %v455_v43 = vpop.f32.mrb[0].mxu1 }
 0x1de   : > { %v456_v44 = vadd.f32 %v636_v42, %v455_v43  ;;  %v714_v45 = vpop.f32.mrb[1].mxu1 }
 0x1e0   : > { %v637_v46 = vmul.f32 -1.442695, %v456_v44 }
 0x1e2   : > { %796 = vpow2.f32 %v637_v46 }
 0x1ec   : > { %v797_v47 = vpop.eup %796 }
 0x1ed   : > { %v462_v48 = vadd.f32 1.0, %v797_v47 }
 0x1ef   : > { %798 = vrcp.f32 %v462_v48 }
 0x1f9   : > { %v799_v49 = vpop.eup %798 }
 0x1fa   : > { %718 = vmatmul.mubr.msk.f32.vlgmr.msra.gmra.mrb[2].mxu0 %vm473_vm2, %v799_v49 }
 0x2cd   : > { %v543_v51 = vpop.f32.mrb[2].mxu0 }
 0x2ce   : > { %v544_v52 = vadd.f32 %v638_v50, %v543_v51  ;;  %v719_v53 = vpop.f32.mrb[3].mxu0 }
 0x2d0   : > { %v640_v54 = vmul.f32 -1.442695, %v544_v52 }
 0x2d2   : > { %800 = vpow2.f32 %v640_v54 }
 0x2dc   : > { %v801_v55 = vpop.eup %800 }
 0x2dd   : > { %v550_v56 = vadd.f32 1.0, %v801_v55 }
 0x2df   : > { %802 = vrcp.f32 %v550_v56 }
 0x2e9   : > { %v803_v57 = vpop.eup %802 }
 0x2ea   : > { %553 = vst [vmem:[%s269_s13] sm:$0xff] %v803_v57 }
 0x2eb   : > { %817 = shalt.err (!%p814_p3)
}
 0x2ec   : > { %s818_s22 = scalar_lea.hbm %s1045_s17, 128  ;;  %s822_s8 = scalar_lea.hbm %s1094_s7, 256 }
 0x2ed   : > { %p819_p4 = scmp.ne.s32.totalorder %s1045_s17, %s818_s22  ;;  %p823_p9 = scmp.lt.u32.totalorder %s1045_s17, %s1094_s7 }
 0x2ee   : > { %p824_p10 = scmp.lt.u32.totalorder %s822_s8, %s818_s22  ;;  %p826_p12 = scmp.lt.u32.totalorder %s818_s22, %s1045_s17 }
 0x2ef   : > { %p820_p7 = pnand %p819_p4, %p950_p5 }
 0x2f0   : > { %p825_p11 = por %p824_p10, %p823_p9 }
 0x2f1   : > { %p821_p8 = pneg %p820_p7 }
 0x2f2   : > { %p827_p13 = por %p826_p12, %p825_p11 }
 0x2f4   : > { %p828_p0 = pnand %p827_p13, %p821_p8 }
 0x2f6   : > { %831 = shalt.err (!%p828_p0)
}
 0x2f7   : > { %750 = dma.vmem_to_hbm [thread:$0]  (%p950_p5), %s1047_s14, 128, %s1045_s17, %s555_s18  }
 0x2f8 PF: > { %p756_p1 = scmp.ge.s32.totalorder %s866_s27, 2  ;;  %s580_s15 = sand.u32 1, %s854_s24  }
 0x2f9   : > { %s581_s16 = scalar_lea.sflag [#allocation3], %s580_s15 }
 0x2fa   : > { %p753_p2 = pnand %p756_p1, %p954_p6 }
 0x2fc   : > { %849 = dma.done.wait (!%p753_p2), %s581_s16, 128  }
 0x2fd   : > { %851 = vsyncadd (!%p753_p2), %s581_s16, 4294967168  ;;  %p17_p3 = scmp.ge.s32.totalorder %s937_s30, 4   ;;  %s1097_s24 = smov %s858_s25 }
 0x2fe   : > { %s1098_s25 = smov %s862_s26  ;;  %s1099_s26 = smov %s948_s10 }
 0x2ff   : > { %s1100_s27 = smov %s937_s30  ;;  %19 = sbr.rel (!%p17_p3) target bundleno = 3 (0x3), region = 83 }
 0x306   :  { %586 = vsyncpa [#allocation3], 1 }
 0x307   :  { %588 = vsyncpa [#allocation3 + $0x1], 1 }

// kernel: tpu_custom_call.1
= control target key start
LH: loop header
LB: loop body
LE: loop exit
PB: predicated region body
PF: predicated region fallthrough
CT: control target
= control target key end

     0   :  { %12 = vsyncpa [#allocation3], 0  ;;  %s1087_s0 = inlined_call_operand.vmem [shape: f32[16,32], index: 0, kind: input, shape index: {}]   ;;  %s1088_s1 = inlined_call_operand.vmem [shape: f32[32,128], index: 1, kind: input, shape index: {}]   ;;  %s1089_s2 = inlined_call_operand.vmem [shape: f32[1,128], index: 2, kind: input, shape index: {}]   ;;  %s1090_s3 = inlined_call_operand.vmem [shape: f32[128,8], index: 3, kind: input, shape index: {}]   ;;  %s1091_s4 = inlined_call_operand.vmem [shape: f32[1,8], index: 4, kind: input, shape index: {}]   ;;  %s1092_s5 = inlined_call_operand.vmem [shape: f32[8,128], index: 5, kind: input, shape index: {}]   ;;  %s1093_s6 = inlined_call_operand.vmem [shape: f32[1,128], index: 6, kind: input, shape index: {}]   ;;  %s1094_s7 = inlined_call_operand.hbm [shape: f32[16,128], index: 7, kind: output, shape index: {}]  }
   0x1   :  { %14 = vsyncpa [#allocation3 + $0x1], 0  ;;  %s912_s24 = smov 0   ;;  %s914_s25 = smov 0  }
   0x2   :  { %s916_s26 = smov 0   ;;  %s918_s27 = smov 0  }
   0x3 LB: > { %s933_s28 = sadd.s32 4294967295, %s866_s27   ;;  %s627_s29 = sadd.s32 4294967294, %s866_s27   ;;  %s866_s27 = sphi %s918_s27, %s1100_s27   ;;  %s862_s26 = sphi %s916_s26, %s1099_s26   ;;  %s858_s25 = sphi %s914_s25, %s1098_s25   ;;  %s854_s24 = sphi %s912_s24, %s1097_s24  }
   0x4   : > { %s937_s30 = sadd.s32 1, %s866_s27   ;;  %s179_s8 = sadd.s32 1, %s862_s26 }
   0x5   : > { %s176_s9 = ssub.s32 %s866_s27, %s937_s30  ;;  %p189_p0 = scmp.ne.s32.totalorder %s862_s26, %s858_s25 }
   0x6   : > { %p177_p1 = scmp.eq.s32.totalorder %s176_s9, 0  ;;  %p190_p2 = scmp.eq.s32.totalorder %s933_s28, 1 }
   0x7   : > { %p195_p3 = scmp.ne.s32.totalorder %s858_s25, %s854_s24  ;;  %p196_p4 = scmp.eq.s32.totalorder %s627_s29, 1 }
   0x8   : > { %s948_s10 = scalar_select %p177_p1, %s862_s26, %s179_s8  }
   0x9   : > { %p950_p5 = por %p190_p2, %p189_p0  ;;  %p954_p6 = por %p196_p4, %p195_p3 }
   0xa   : > { %p630_p7 = scmp.ge.s32.totalorder %s866_s27, 1  ;;  %p239_p8 = scmp.lt.s32.totalorder %s866_s27, 3 }
   0xc   : > { %p240_p9 = pnand %p630_p7, %p239_p8 }
   0xd   : > { %v275_v0 = vld [vmem:[%s1088_s1] sm:$0xff] (!%p240_p9)  ;;  %v276_v1 = vld [vmem:[%s1088_s1 + $0x8] sm:$0xff] (!%p240_p9)  ;;  %v277_v2 = vld [vmem:[%s1088_s1 + $0x10] sm:$0xff] (!%p240_p9)  ;;  %v868_v3 = vmov (!%p240_p9), 0.0|0.0   ;;  %vm869_vm0 = vmmov (!%p240_p9), 0   ;;  %v870_v6 = vmov (!%p240_p9), 0.0  }
   0xe   : > { %243 = sbr.rel (%p240_p9) target bundleno = 760 (0x2f8), region = 48  ;;  %720 = vmatprep.subr.bf16.mxu0 (!%p240_p9), %v868_v3  ;;  %v721_v4 = vpack.c.bf16 (!%p240_p9), %v276_v1, %v275_v0  ;;  %v278_v5 = vld [vmem:[%s1088_s1 + $0x18] sm:$0xff] (!%p240_p9)  ;;  %677 = vmatprep.mubr.msk.f32.mxu0 (!%p240_p9), %vm869_vm0, %v870_v6  ;;  %p270_p10 = scmp.lt.s32.totalorder (!%p240_p9), %s933_s28, 1  ;;  %v366_v7 = vld [vmem:[%s1090_s3] sm:$0xff] (!%p240_p9)  ;;  %v367_v8 = vld [vmem:[%s1090_s3 + $0x8] sm:$0xff] (!%p240_p9)  ;;  %vm286_vm1 = vcmask (!%p240_p9), 261120  }
   0xf   : > { %726 = vmatprep.subr.bf16.mxu1 (!%p240_p9), %v868_v3  ;;  %v727_v9 = vpack.c.bf16 (!%p240_p9), %v367_v8, %v366_v7  ;;  %712 = vmatprep.mubr.msk.f32.mxu1 (!%p240_p9), %vm869_vm0, %v870_v6  ;;  %v724_v10 = vpack.c.bf16 (!%p240_p9), %v278_v5, %v277_v2  ;;  %v368_v12 = vld [vmem:[%s1090_s3 + $0x10] sm:$0xff] (!%p240_p9)  ;;  %v369_v13 = vld [vmem:[%s1090_s3 + $0x18] sm:$0xff] (!%p240_p9)  ;;  %v370_v15 = vld [vmem:[%s1090_s3 + $0x20] sm:$0xff] (!%p240_p9)  ;;  %vm473_vm2 = vcmask (!%p240_p9), 64512   ;;  %s267_s29 = sand.u32 (!%p240_p9), 1, %s858_s25  }
  0x10   : > { %722 = vmatpush3.bf16.msra.mxu0 (!%p240_p9), %v721_v4  ;;  %v730_v14 = vpack.c.bf16 (!%p240_p9), %v369_v13, %v368_v12  ;;  %v371_v16 = vld [vmem:[%s1090_s3 + $0x28] sm:$0xff] (!%p240_p9)  ;;  %v372_v18 = vld [vmem:[%s1090_s3 + $0x30] sm:$0xff] (!%p240_p9)  ;;  %v373_v19 = vld [vmem:[%s1090_s3 + $0x38] sm:$0xff] (!%p240_p9)  ;;  %s555_s18 = scalar_lea.sflag (!%p240_p9), [#allocation3], %s267_s29 }
  0x11   : > { %723 = vmatprep.subr.bf16.mxu0 (!%p240_p9), %v868_v3  ;;  %728 = vmatpush3.bf16.msra.mxu1 (!%p240_p9), %v727_v9  ;;  %v733_v17 = vpack.c.bf16 (!%p240_p9), %v371_v16, %v370_v15  ;;  %v736_v20 = vpack.c.bf16 (!%p240_p9), %v373_v19, %v372_v18  ;;  %v374_v21 = vld [vmem:[%s1090_s3 + $0x40] sm:$0xff] (!%p240_p9)  ;;  %v375_v22 = vld [vmem:[%s1090_s3 + $0x48] sm:$0xff] (!%p240_p9)  ;;  %v376_v24 = vld [vmem:[%s1090_s3 + $0x50] sm:$0xff] (!%p240_p9) }
  0x12   : > { %729 = vmatprep.subr.bf16.mxu1 (!%p240_p9), %v868_v3  ;;  %v739_v23 = vpack.c.bf16 (!%p240_p9), %v375_v22, %v374_v21  ;;  %v377_v25 = vld [vmem:[%s1090_s3 + $0x58] sm:$0xff] (!%p240_p9)  ;;  %v378_v27 = vld [vmem:[%s1090_s3 + $0x60] sm:$0xff] (!%p240_p9)  ;;  %v379_v28 = vld [vmem:[%s1090_s3 + $0x68] sm:$0xff] (!%p240_p9) }
  0x13   : > { %v742_v26 = vpack.c.bf16 (!%p240_p9), %v377_v25, %v376_v24  ;;  %v745_v29 = vpack.c.bf16 (!%p240_p9), %v379_v28, %v378_v27  ;;  %v380_v30 = vld [vmem:[%s1090_s3 + $0x70] sm:$0xff] (!%p240_p9)  ;;  %v381_v31 = vld [vmem:[%s1090_s3 + $0x78] sm:$0xff] (!%p240_p9)  ;;  %v633_v33 = vld [vmem:[%s1089_s2] ss:$0 sm:$0xff] (!%p240_p9) }
  0x14   : > { %725 = vmatpush3.bf16.msra.mxu0 (!%p240_p9), %v724_v10  ;;  %v748_v32 = vpack.c.bf16 (!%p240_p9), %v381_v31, %v380_v30  ;;  %v465_v41 = vld [vmem:[%s1092_s5] sm:$0xff] (!%p240_p9) }
  0x15   : > { %s271_s8 = scalar_select %p270_p10, %s933_s28, 1  ;;  %715 = vmatprep.subr.mxu0 %v870_v6  ;;  %731 = vmatpush3.bf16.msra.mxu1 %v730_v14  ;;  %v636_v42 = vld [vmem:[%s1091_s4] ss:$0 sm:$0xff] }
  0x16   : > { %732 = vmatprep.subr.bf16.mxu1 %v868_v3  ;;  %v638_v50 = vld [vmem:[%s1093_s6] ss:$0 sm:$0xff] }
  0x17   : > { %s632_s9 = sshll.u32 %s271_s8, 3  ;;  %s631_s8 = sshll.u32 %s267_s29, 3 }
  0x18   : > { %s273_s15 = scalar_lea.vmem %s1087_s0, %s632_s9  ;;  %s642_s9 = sshll.u32 %s933_s28, 7 }
  0x19   : > { %v274_v11 = vld [vmem:[%s273_s15] sm:$0xff]  ;;  %734 = vmatpush3.bf16.msra.mxu1 %v733_v17  ;;  %s269_s13 = scalar_lea.vmem [#allocation2], %s631_s8  ;;  %s1045_s17 = scalar_lea.hbm %s1094_s7, %s642_s9 }
  0x1a   : > { %678 = vmatmul.mubr.msk.f32.vlgmr.msra.gmra.mrb[0].mxu0 %vm286_vm1, %v274_v11  ;;  %735 = vmatprep.subr.bf16.mxu1 %v868_v3  ;;  %s568_s14 = sshll.u32 %s269_s13, 4  ;;  %s871_s28 = smov [#allocation2]   ;;  %s1047_s14 = int_to_ptr.vmem [resolvable:$true] %s568_s14 }
  0x1b   : > { %717 = vmatprep.mubr.msk.f32.mxu0 %vm869_vm0, %v870_v6  ;;  %716 = vmatpush3.msra.mxu0 %v465_v41  ;;  %s804_s19 = scalar_lea.vmem %s1047_s14, 128  ;;  %s808_s20 = sshll.u32 %s871_s28, 4  ;;  %s809_s20 = int_to_ptr.vmem [resolvable:$false] %s808_s20 }
  0x1c   : > { %p805_p11 = scmp.ne.s32.totalorder %s1047_s14, %s804_s19  ;;  %s810_s21 = scalar_lea.vmem %s809_s20, 256 }
  0x1d   : > { %737 = vmatpush3.bf16.msra.mxu1 %v736_v20  ;;  %p811_p0 = scmp.lt.s32.totalorder %s1047_s14, %s809_s20  ;;  %p812_p1 = scmp.lt.s32.totalorder %s810_s21, %s804_s19 }
  0x1e   : > { %738 = vmatprep.subr.bf16.mxu1 %v868_v3  ;;  %p806_p12 = pnand %p805_p11, %p950_p5 }
  0x1f   : > { %p813_p2 = por %p812_p1, %p811_p0 }
  0x20   : > { %p807_p13 = pneg %p806_p12 }
  0x21   : > { %740 = vmatpush3.bf16.msra.mxu1 %v739_v23 }
  0x22   : > { %741 = vmatprep.subr.bf16.mxu1 %v868_v3  ;;  %p814_p3 = pnand %p813_p2, %p807_p13 }
  0x25   : > { %743 = vmatpush3.bf16.msra.mxu1 %v742_v26 }
  0x26   : > { %744 = vmatprep.subr.bf16.mxu1 %v868_v3 }
  0x29   : > { %746 = vmatpush3.bf16.msra.mxu1 %v745_v29 }
  0x2a   : > { %747 = vmatprep.subr.bf16.mxu1 %v868_v3 }
  0x2d   : > { %749 = vmatpush3.bf16.msra.mxu1 %v748_v32 }
  0xed   : > { %v356_v34 = vpop.f32.mrb[0].mxu0 }
  0xee   : > { %v357_v35 = vadd.f32 %v633_v33, %v356_v34  ;;  %v679_v36 = vpop.f32.mrb[1].mxu0 }
  0xf0   : > { %v635_v37 = vmul.f32 -1.442695, %v357_v35 }
  0xf2   : > { %792 = vpow2.f32 %v635_v37 }
  0xfc   : > { %v793_v38 = vpop.eup %792 }
  0xfd   : > { %v363_v39 = vadd.f32 1.0, %v793_v38 }
  0xff   : > { %794 = vrcp.f32 %v363_v39 }
 0x109   : > { %v795_v40 = vpop.eup %794 }
 0x10a   : > { %713 = vmatmul.mubr.f32.vlgmr.msra.gmra.mrb[0].mxu1 %v795_v40 }
 0x1dd   : > { %v455_v43 = vpop.f32.mrb[0].mxu1 }
 0x1de   : > { %v456_v44 = vadd.f32 %v636_v42, %v455_v43  ;;  %v714_v45 = vpop.f32.mrb[1].mxu1 }
 0x1e0   : > { %v637_v46 = vmul.f32 -1.442695, %v456_v44 }
 0x1e2   : > { %796 = vpow2.f32 %v637_v46 }
 0x1ec   : > { %v797_v47 = vpop.eup %796 }
 0x1ed   : > { %v462_v48 = vadd.f32 1.0, %v797_v47 }
 0x1ef   : > { %798 = vrcp.f32 %v462_v48 }
 0x1f9   : > { %v799_v49 = vpop.eup %798 }
 0x1fa   : > { %718 = vmatmul.mubr.msk.f32.vlgmr.msra.gmra.mrb[2].mxu0 %vm473_vm2, %v799_v49 }
 0x2cd   : > { %v543_v51 = vpop.f32.mrb[2].mxu0 }
 0x2ce   : > { %v544_v52 = vadd.f32 %v638_v50, %v543_v51  ;;  %v719_v53 = vpop.f32.mrb[3].mxu0 }
 0x2d0   : > { %v640_v54 = vmul.f32 -1.442695, %v544_v52 }
 0x2d2   : > { %800 = vpow2.f32 %v640_v54 }
 0x2dc   : > { %v801_v55 = vpop.eup %800 }
 0x2dd   : > { %v550_v56 = vadd.f32 1.0, %v801_v55 }
 0x2df   : > { %802 = vrcp.f32 %v550_v56 }
 0x2e9   : > { %v803_v57 = vpop.eup %802 }
 0x2ea   : > { %553 = vst [vmem:[%s269_s13] sm:$0xff] %v803_v57 }
 0x2eb   : > { %817 = shalt.err (!%p814_p3)
}
 0x2ec   : > { %s818_s22 = scalar_lea.hbm %s1045_s17, 128  ;;  %s822_s8 = scalar_lea.hbm %s1094_s7, 256 }
 0x2ed   : > { %p819_p4 = scmp.ne.s32.totalorder %s1045_s17, %s818_s22  ;;  %p823_p9 = scmp.lt.u32.totalorder %s1045_s17, %s1094_s7 }
 0x2ee   : > { %p824_p10 = scmp.lt.u32.totalorder %s822_s8, %s818_s22  ;;  %p826_p12 = scmp.lt.u32.totalorder %s818_s22, %s1045_s17 }
 0x2ef   : > { %p820_p7 = pnand %p819_p4, %p950_p5 }
 0x2f0   : > { %p825_p11 = por %p824_p10, %p823_p9 }
 0x2f1   : > { %p821_p8 = pneg %p820_p7 }
 0x2f2   : > { %p827_p13 = por %p826_p12, %p825_p11 }
 0x2f4   : > { %p828_p0 = pnand %p827_p13, %p821_p8 }
 0x2f6   : > { %831 = shalt.err (!%p828_p0)
}
 0x2f7   : > { %750 = dma.vmem_to_hbm [thread:$0]  (%p950_p5), %s1047_s14, 128, %s1045_s17, %s555_s18  }
 0x2f8 PF: > { %p756_p1 = scmp.ge.s32.totalorder %s866_s27, 2  ;;  %s580_s15 = sand.u32 1, %s854_s24  }
 0x2f9   : > { %s581_s16 = scalar_lea.sflag [#allocation3], %s580_s15 }
 0x2fa   : > { %p753_p2 = pnand %p756_p1, %p954_p6 }
 0x2fc   : > { %849 = dma.done.wait (!%p753_p2), %s581_s16, 128  }
 0x2fd   : > { %851 = vsyncadd (!%p753_p2), %s581_s16, 4294967168  ;;  %p17_p3 = scmp.ge.s32.totalorder %s937_s30, 4   ;;  %s1097_s24 = smov %s858_s25 }
 0x2fe   : > { %s1098_s25 = smov %s862_s26  ;;  %s1099_s26 = smov %s948_s10 }
 0x2ff   : > { %s1100_s27 = smov %s937_s30  ;;  %19 = sbr.rel (!%p17_p3) target bundleno = 3 (0x3), region = 83 }
 0x306   :  { %586 = vsyncpa [#allocation3], 1 }
 0x307   :  { %588 = vsyncpa [#allocation3 + $0x1], 1 }

</bundles_post_ra>
